<compile_context>
chip_gen: v7x
topology: tpu7x:2x2x1
jax: 0.10.0
libtpu: 0.0.40
codegen_flags: <defaults>
</compile_context>

<pallas_src>
import functools

import jax
import jax.numpy as jnp
from jax import lax
from jax.experimental import pallas as pl
from jax.experimental.pallas import tpu as pltpu


def _round_up(v, m):
    return (v + m - 1) // m * m


def _sigmoid(x):
    # Same explicit formula in kernel and reference so the comparison is exact.
    return 1.0 / (1.0 + jnp.exp(-x))


# ----------------------------------------------------------------------------
# Pallas kernel 1: tiled matmul + bias (+ReLU)
# ----------------------------------------------------------------------------

def _matmul_bias_kernel(x_ref, w_ref, b_ref, o_ref, *, relu):
    acc = jnp.dot(x_ref[...], w_ref[...], preferred_element_type=jnp.float32)
    acc = acc + b_ref[...]
    if relu:
        acc = jnp.maximum(acc, 0.0)
    o_ref[...] = acc.astype(o_ref.dtype)


def matmul_bias(x, wp, bp, n_out=None, *, relu=False, out_dtype=jnp.float32,
                tile_m=256):
    """x:[M,K] @ wp:[K,Np] + bp:[1,Np] with pre-packed weights.

    wp/bp are packed once outside jit (bf16 weight, f32 bias, Np a multiple of 128), so
    the activation is never padded/copied here: K stays in-block (full depth) and M / N
    are tiled over a 2-D "parallel" grid (split across TensorCores on v7x).  The output
    is emitted in `out_dtype` (bf16 for intermediate activations) and optionally sliced
    to `n_out` valid columns.
    """
    M, K = x.shape
    Kw, Np = wp.shape
    assert K == Kw and Np % 128 == 0
    assert M % 8 == 0, "callers keep M = T * padded-batch, a multiple of 8"
    tm = min(tile_m, M)
    tn = 128
    for cand in (512, 256, 128):
        if Np % cand == 0:
            tn = cand
            break
    out = pl.pallas_call(
        functools.partial(_matmul_bias_kernel, relu=relu),
        out_shape=jax.ShapeDtypeStruct((M, Np), out_dtype),
        grid=(pl.cdiv(M, tm), Np // tn),
        in_specs=[
            pl.BlockSpec((tm, K), lambda i, j: (i, 0)),
            pl.BlockSpec((K, tn), lambda i, j: (0, j)),
            pl.BlockSpec((1, tn), lambda i, j: (0, j)),
        ],
        out_specs=pl.BlockSpec((tm, tn), lambda i, j: (i, j)),
        compiler_params=pltpu.CompilerParams(
            dimension_semantics=("parallel", "parallel"),
            vmem_limit_bytes=48 * 1024 * 1024),
    )(x.astype(jnp.bfloat16), wp, bp)
    if n_out is not None and n_out != Np:
        out = out[:, :n_out]
    return out


# ----------------------------------------------------------------------------
# Pallas kernel 2: bidirectional LSTM recurrence
#   grid = (direction, time-chunk); each direction is an independent dense recurrence.
# ----------------------------------------------------------------------------

def _bilstm_rec_kernel(xg_ref, whh_ref, h_ref, h_sc, c_sc, *, hidden, t_chunk, unroll):
    d = pl.program_id(0)                  # 0 = forward direction, 1 = backward

    @pl.when(pl.program_id(1) == 0)       # first chunk processed by this direction
    def _():
        h_sc[...] = jnp.zeros_like(h_sc)
        c_sc[...] = jnp.zeros_like(c_sc)

    whh = whh_ref[0]                      # [H, Gd] bf16, dense per-direction weights
    H = hidden

    def step(s, carry):
        h, c = carry                      # f32 vreg-resident state (no VMEM round trip)
        # fwd walks the chunk forward, bwd walks it backward: in-kernel time reversal.
        t = (1 - d) * s + d * (t_chunk - 1 - s)
        gates = xg_ref[t].astype(jnp.float32) + jnp.dot(
            h.astype(jnp.bfloat16), whh, preferred_element_type=jnp.float32)
        i = _sigmoid(gates[:, 0 * H:1 * H])
        f = _sigmoid(gates[:, 1 * H:2 * H])
        g = jnp.tanh(gates[:, 2 * H:3 * H])
        o = _sigmoid(gates[:, 3 * H:4 * H])
        c = f * c + i * g
        h = o * jnp.tanh(c)
        h_ref[0, t] = h.astype(h_ref.dtype)
        return h, c

    h0, c0 = h_sc[...], c_sc[...]
    hT, cT = lax.fori_loop(0, t_chunk, step, (h0, c0), unroll=unroll)
    h_sc[...] = hT                        # persist state across time chunks
    c_sc[...] = cT


def bilstm_layer_pallas(x_tm, packed, hidden, *, t_chunk=64):
    """One BidirectionalLSTM(input_size, hidden, hidden) layer.

    x_tm: [T, Bp, Cin] bf16 time-major activations (batch already padded to 8).
    Returns [T, Bp, hidden] bf16.
    """
    T, Bp, Cin = x_tm.shape
    H = hidden
    Gd = _round_up(4 * H, 128)            # per-direction packed gate width (i|f|g|o)

    # Fused input projection for both directions: [T*Bp, Cin] @ [Cin, 2*Gd] -> bf16 xg.
    xg = matmul_bias(x_tm.reshape(T * Bp, Cin), packed["w_in"], packed["b_in"],
                     out_dtype=jnp.bfloat16)
    xg = xg.reshape(T, Bp, 2 * Gd)

    Tc = min(t_chunk, T)
    if T % Tc:
        # Zero xg rows keep (h, c) exactly at the (0, 0) fixed point (sigmoid(0)*0 = 0),
        # so trailing time padding is numerically exact for both directions.
        Tp = _round_up(T, Tc)
        xg = jnp.pad(xg, ((0, Tp - T), (0, 0), (0, 0)))
    else:
        Tp = T
    n_chunks = Tp // Tc

    def chunk_idx(d, c):                  # bwd consumes the time chunks in reverse order
        return (1 - d) * c + d * (n_chunks - 1 - c)

    h_all = pl.pallas_call(
        functools.partial(_bilstm_rec_kernel, hidden=H, t_chunk=Tc,
                          unroll=min(8, Tc)),
        out_shape=jax.ShapeDtypeStruct((2, Tp, Bp, H), jnp.bfloat16),
        grid=(2, n_chunks),
        in_specs=[
            pl.BlockSpec((Tc, Bp, Gd), lambda d, c: (chunk_idx(d, c), 0, d)),
            pl.BlockSpec((1, H, Gd), lambda d, c: (d, 0, 0)),
        ],
        out_specs=pl.BlockSpec((1, Tc, Bp, H),
                               lambda d, c: (d, chunk_idx(d, c), 0, 0)),
        scratch_shapes=[pltpu.VMEM((Bp, H), jnp.float32),
                        pltpu.VMEM((Bp, H), jnp.float32)],
        compiler_params=pltpu.CompilerParams(
            dimension_semantics=("parallel", "arbitrary"),
            vmem_limit_bytes=48 * 1024 * 1024),
    )(xg, packed["whh"])

    # [T, Bp, 2H]; the bwd half was already written at its true time index in-kernel.
    rec = jnp.concatenate([h_all[0, :T], h_all[1, :T]], axis=-1)
    lin = packed["lin"]
    out = matmul_bias(rec.reshape(T * Bp, 2 * H), lin["w"], lin["b"],
                      n_out=H, out_dtype=jnp.bfloat16)
    return out.reshape(T, Bp, -1)


# ----------------------------------------------------------------------------
# One-time weight packing (runs eagerly, outside the jitted forward)
# ----------------------------------------------------------------------------

def pack_params(params, hidden):
    H = hidden
    Gd = _round_up(4 * H, 128)

    def pack_dir(pd):
        # Padded gate lanes have zero weight AND zero bias, so they never influence the
        # real hidden units (and are never read back).
        w = jnp.pad(pd["w_ih_t"], ((0, 0), (0, Gd - 4 * H))).astype(jnp.bfloat16)
        b = jnp.pad(pd["b_ih"] + pd["b_hh"], (0, Gd - 4 * H)).astype(jnp.float32)
        whh = jnp.pad(pd["w_hh_t"], ((0, 0), (0, Gd - 4 * H))).astype(jnp.bfloat16)
        return w, b, whh

    def pack_linear(w, b):
        n = w.shape[1]
        npad = _round_up(n, 128)
        return {"w": jnp.pad(w, ((0, 0), (0, npad - n))).astype(jnp.bfloat16),
                "b": jnp.pad(b, (0, npad - n)).astype(jnp.float32).reshape(1, npad)}

    def pack_bilstm(p):
        wf, bf_, whf = pack_dir(p["fwd"])
        wb, bb, whb = pack_dir(p["bwd"])
        return {"w_in": jnp.concatenate([wf, wb], axis=1),      # [Cin, 2*Gd]
                "b_in": jnp.concatenate([bf_, bb]).reshape(1, 2 * Gd),
                "whh": jnp.stack([whf, whb]),                    # [2, H, Gd]
                "lin": pack_linear(p["w_lin_t"], p["b_lin"])}

    return {"convs": params["convs"],
            "bilstm1": pack_bilstm(params["bilstm1"]),
            "bilstm2": pack_bilstm(params["bilstm2"]),
            "fc": pack_linear(params["fc"]["w_t"], params["fc"]["b"])}


# ----------------------------------------------------------------------------
# Shared feature extractor + pooling (used by both the Pallas and reference paths)
# ----------------------------------------------------------------------------

def features_and_pool(x_nchw, convs):
    # TODO(synk): MambaOut backbone source not provided; 4-stage stride-2 conv+ReLU
    #             stand-in, run with XLA's native conv (Pallas handles the LSTM/FC part).
    x = jnp.transpose(x_nchw, (0, 2, 3, 1)).astype(jnp.float32)   # NCHW -> NHWC
    for c in convs:
        x = lax.conv_general_dilated(
            x, c["w"], window_strides=(2, 2), padding=((1, 1), (1, 1)),
            dimension_numbers=("NHWC", "HWIO", "NHWC"))
        x = jnp.maximum(x + c["b"], 0.0)
    # permute(0,3,1,2) + AdaptiveAvgPool2d((None,1)) + squeeze(3)  ==  mean over H,
    # sequence along W, features = channels.
    seq = jnp.mean(x, axis=1)                                     # [B, W, C]
    return jnp.transpose(seq, (1, 0, 2))                          # [T=W, B, C] time-major


# ----------------------------------------------------------------------------
# Pallas forward
# ----------------------------------------------------------------------------

def cnnocr_forward_pallas(x_nchw, packed, *, hidden, num_classes):
    seq = features_and_pool(x_nchw, packed["convs"])              # [T, B, C] f32
    T, B, _ = seq.shape
    Bp = _round_up(B, 8)                                          # sublane-align batch once
    seq = jnp.pad(seq, ((0, 0), (0, Bp - B), (0, 0))).astype(jnp.bfloat16)
    seq = bilstm_layer_pallas(seq, packed["bilstm1"], hidden)
    seq = bilstm_layer_pallas(seq, packed["bilstm2"], hidden)
    fc = packed["fc"]
    logits = matmul_bias(seq.reshape(T * Bp, hidden), fc["w"], fc["b"],
                         n_out=num_classes, out_dtype=jnp.float32)
    logits = logits.reshape(T, Bp, num_classes)[:, :B]            # drop padded batch rows
    return jnp.transpose(logits, (1, 0, 2))                       # [B, T, num_classes]


# ----------------------------------------------------------------------------
# Pure-JAX reference (mirrors the precision choices: bf16 MXU feeds, f32 accumulation,
# bf16 intermediate activations)
# ----------------------------------------------------------------------------

def bilstm_layer_ref(x_tm, p, hidden):
    T, B, Cin = x_tm.shape
    H = hidden
    outs = []
    for name in ("fwd", "bwd"):
        pd = p[name]
        xg = jnp.dot(x_tm.reshape(T * B, Cin).astype(jnp.bfloat16),
                     pd["w_ih_t"].astype(jnp.bfloat16),
                     preferred_element_type=jnp.float32)
        xg = xg + (pd["b_ih"] + pd["b_hh"]).astype(jnp.float32)
        xg = xg.astype(jnp.bfloat16).astype(jnp.float32).reshape(T, B, 4 * H)
        if name == "bwd":
            xg = xg[::-1]
        whh = pd["w_hh_t"].astype(jnp.bfloat16)

        def step(carry, g):
            h, c = carry
            gates = g + jnp.dot(h.astype(jnp.bfloat16), whh,
                                preferred_element_type=jnp.float32)
            i = _sigmoid(gates[:, 0 * H:1 * H])
            f = _sigmoid(gates[:, 1 * H:2 * H])
            gg = jnp.tanh(gates[:, 2 * H:3 * H])
            o = _sigmoid(gates[:, 3 * H:4 * H])
            c = f * c + i * gg
            h = o * jnp.tanh(c)
            return (h, c), h

        init = (jnp.zeros((B, H), jnp.float32), jnp.zeros((B, H), jnp.float32))
        _, hs = lax.scan(step, init, xg)
        if name == "bwd":
            hs = hs[::-1]
        outs.append(hs)
    rec = jnp.concatenate(outs, axis=-1).astype(jnp.bfloat16)
    out = jnp.dot(rec.reshape(T * B, 2 * H), p["w_lin_t"].astype(jnp.bfloat16),
                  preferred_element_type=jnp.float32) + p["b_lin"].astype(jnp.float32)
    return out.astype(jnp.bfloat16).reshape(T, B, -1)


def cnnocr_forward_ref(x_nchw, params, *, hidden, num_classes):
    seq = features_and_pool(x_nchw, params["convs"]).astype(jnp.bfloat16)
    seq = bilstm_layer_ref(seq, params["bilstm1"], hidden)
    seq = bilstm_layer_ref(seq, params["bilstm2"], hidden)
    T, B, _ = seq.shape
    logits = jnp.dot(seq.reshape(T * B, hidden),
                     params["fc"]["w_t"].astype(jnp.bfloat16),
                     preferred_element_type=jnp.float32) + params["fc"]["b"]
    return jnp.transpose(logits.reshape(T, B, num_classes), (1, 0, 2))


# ----------------------------------------------------------------------------
# Deterministic parameter init (synthetic; shapes follow the module's __init__)
# ----------------------------------------------------------------------------

def init_params(key, in_ch, dims, hidden, num_classes):
    keys = iter(jax.random.split(key, 64))

    def nrm(shape, scale=0.1):
        return scale * jax.random.normal(next(keys), shape, jnp.float32)

    params = {"convs": []}
    cprev = in_ch
    for c in dims:
        params["convs"].append({"w": nrm((3, 3, cprev, c)), "b": nrm((c,), 0.01)})
        cprev = c

    def lstm_dir(in_size):
        return {"w_ih_t": nrm((in_size, 4 * hidden)),
                "w_hh_t": nrm((hidden, 4 * hidden)),
                "b_ih": nrm((4 * hidden,), 0.01),
                "b_hh": nrm((4 * hidden,), 0.01)}

    def bilstm(in_size, out_size):
        return {"fwd": lstm_dir(in_size), "bwd": lstm_dir(in_size),
                "w_lin_t": nrm((2 * hidden, out_size)), "b_lin": nrm((out_size,), 0.01)}

    params["bilstm1"] = bilstm(dims[-1], hidden)
    params["bilstm2"] = bilstm(hidden, hidden)
    params["fc"] = {"w_t": nrm((hidden, num_classes)), "b": nrm((num_classes,), 0.01)}
    return params


# ----------------------------------------------------------------------------
# Main
# ----------------------------------------------------------------------------

if __name__ == "__main__":
    # Small shapes (scaled-down dims / hidden_size).
    B, IN_CH, IMG_H, IMG_W = 2, 3, 32, 64
    DIMS = (8, 16, 24, 32)          # dims[-1] feeds the first BiLSTM
    HIDDEN = 32
    NUM_CLASSES = 11

    key = jax.random.PRNGKey(0)
    kx, kp = jax.random.split(key)
    x = jax.random.normal(kx, (B, IN_CH, IMG_H, IMG_W), jnp.float32)
    params = init_params(kp, IN_CH, DIMS, HIDDEN, NUM_CLASSES)
    packed = pack_params(params, HIDDEN)   # one-time weight packing, outside jit

    fwd_pallas = jax.jit(lambda xx, pp: cnnocr_forward_pallas(
        xx, pp, hidden=HIDDEN, num_classes=NUM_CLASSES))
    fwd_ref = jax.jit(lambda xx, pp: cnnocr_forward_ref(
        xx, pp, hidden=HIDDEN, num_classes=NUM_CLASSES))

    out = jax.block_until_ready(fwd_pallas(x, packed))
    ref = jax.block_until_ready(fwd_ref(x, params))

    T_expected = IMG_W // 16        # four stride-2 convs -> W/16 sequence steps
    assert out.shape == (B, T_expected, NUM_CLASSES), out.shape
    assert bool(jnp.all(jnp.isfinite(out)))
    assert jnp.allclose(out, ref, atol=2e-2, rtol=2e-2), \
        float(jnp.max(jnp.abs(out - ref)))

    print("KERNEL_OK")
</pallas_src>

<mosaic_0001>
module attributes {stable_mosaic.version = 11 : i64} {
  func.func @_bilstm_rec_kernel(%arg0: i32, %arg1: i32, %arg2: memref<4x8x128xbf16, #tpu.memory_space<vmem>>, %arg3: memref<1x32x128xbf16, #tpu.memory_space<vmem>>, %arg4: memref<1x4x8x32xbf16, #tpu.memory_space<vmem>>, %arg5: memref<8x32xf32, #tpu.memory_space<vmem>>, %arg6: memref<8x32xf32, #tpu.memory_space<vmem>>) attributes {dimension_semantics = [#tpu.dimension_semantics<parallel>, #tpu.dimension_semantics<arbitrary>], iteration_bounds = array<i64: 2, 1>, scalar_prefetch = 0 : i64, scratch_operands = 2 : i64, tpu.core_type = #tpu.core_type<tc>, window_params = [{transform_indices = @transform_0, window_bounds = array<i64: 4, 8, 128>}, {transform_indices = @transform_1, window_bounds = array<i64: 1, 32, 128>}, {transform_indices = @transform_2, window_bounds = array<i64: 1, 4, 8, 32>}]} {
    %c0_i32 = arith.constant 0 : i32
    %0 = arith.cmpi eq, %arg1, %c0_i32 : i32
    %1 = arith.extui %0 : i1 to i32
    %c0_i32_0 = arith.constant 0 : i32
    %2 = arith.cmpi ne, %1, %c0_i32_0 : i32
    scf.if %2 {
      %cst_79 = arith.constant 0.000000e+00 : f32
      %201 = vector.broadcast %cst_79 : f32 to vector<8x32xf32>
      %c0_80 = arith.constant 0 : index
      %c0_81 = arith.constant 0 : index
      %202 = vector.load %arg5[%c0_80, %c0_81] : memref<8x32xf32, #tpu.memory_space<vmem>>, vector<8x32xf32>
      tpu.vector_store %arg5[%c0_80, %c0_81], %201 {strides = array<i32>} : memref<8x32xf32, #tpu.memory_space<vmem>>, vector<8x32xf32>,
      %cst_82 = arith.constant 0.000000e+00 : f32
      %203 = vector.broadcast %cst_82 : f32 to vector<8x32xf32>
      %c0_83 = arith.constant 0 : index
      %c0_84 = arith.constant 0 : index
      %204 = vector.load %arg6[%c0_83, %c0_84] : memref<8x32xf32, #tpu.memory_space<vmem>>, vector<8x32xf32>
      tpu.vector_store %arg6[%c0_83, %c0_84], %203 {strides = array<i32>} : memref<8x32xf32, #tpu.memory_space<vmem>>, vector<8x32xf32>,
    } else {
    }
    %c0 = arith.constant 0 : index
    %c0_1 = arith.constant 0 : index
    %c0_2 = arith.constant 0 : index
    %3 = vector.load %arg3[%c0, %c0_1, %c0_2] : memref<1x32x128xbf16, #tpu.memory_space<vmem>>, vector<1x32x128xbf16>
    %4 = vector.shape_cast %3 : vector<1x32x128xbf16> to vector<32x128xbf16>
    %c0_3 = arith.constant 0 : index
    %c0_4 = arith.constant 0 : index
    %5 = vector.load %arg5[%c0_3, %c0_4] : memref<8x32xf32, #tpu.memory_space<vmem>>, vector<8x32xf32>
    %c0_5 = arith.constant 0 : index
    %c0_6 = arith.constant 0 : index
    %6 = vector.load %arg6[%c0_5, %c0_6] : memref<8x32xf32, #tpu.memory_space<vmem>>, vector<8x32xf32>
    %c0_i32_7 = arith.constant 0 : i32
    %c1_i32 = arith.constant 1 : i32
    %7 = arith.subi %c1_i32, %arg0 : i32
    %8 = arith.muli %7, %c0_i32_7 : i32
    %c3_i32 = arith.constant 3 : i32
    %9 = arith.subi %c3_i32, %c0_i32_7 : i32
    %10 = arith.muli %arg0, %9 : i32
    %11 = arith.addi %8, %10 : i32
    %12 = arith.index_cast %11 : i32 to index
    %c0_8 = arith.constant 0 : index
    %c0_9 = arith.constant 0 : index
    %13 = vector.load %arg2[%12, %c0_8, %c0_9] : memref<4x8x128xbf16, #tpu.memory_space<vmem>>, vector<1x8x128xbf16>
    %14 = vector.shape_cast %13 : vector<1x8x128xbf16> to vector<8x128xbf16>
    %15 = arith.extf %14 : vector<8x128xbf16> to vector<8x128xf32>
    %16 = arith.truncf %5 : vector<8x32xf32> to vector<8x32xbf16>
    %cst = arith.constant dense<0.000000e+00> : vector<8x128xf32>
    %17 = tpu.matmul %16, %4, %cst {dimension_numbers = #tpu.dot_dimension_numbers<[1], [0], [0], [1], [0, 0, 1, 1], [], []>} : vector<8x32xbf16>, vector<32x128xbf16>, vector<8x128xf32> -> vector<8x128xf32>
    %18 = arith.addf %15, %17 : vector<8x128xf32>
    %19 = vector.extract_strided_slice %18 {offsets = [0, 0], sizes = [8, 32], strides = [1, 1]} : vector<8x128xf32> to vector<8x32xf32>
    %cst_10 = arith.constant 0.000000e+00 : f32
    %20 = vector.broadcast %cst_10 : f32 to vector<8x32xf32>
    %21 = arith.subf %20, %19 : vector<8x32xf32>
    %22 = math.exp %21 : vector<8x32xf32>
    %cst_11 = arith.constant 1.000000e+00 : f32
    %23 = vector.broadcast %cst_11 : f32 to vector<8x32xf32>
    %24 = arith.addf %23, %22 : vector<8x32xf32>
    %cst_12 = arith.constant 1.000000e+00 : f32
    %25 = vector.broadcast %cst_12 : f32 to vector<8x32xf32>
    %26 = arith.divf %25, %24 : vector<8x32xf32>
    %27 = vector.extract_strided_slice %18 {offsets = [0, 32], sizes = [8, 32], strides = [1, 1]} : vector<8x128xf32> to vector<8x32xf32>
    %cst_13 = arith.constant 0.000000e+00 : f32
    %28 = vector.broadcast %cst_13 : f32 to vector<8x32xf32>
    %29 = arith.subf %28, %27 : vector<8x32xf32>
    %30 = math.exp %29 : vector<8x32xf32>
    %cst_14 = arith.constant 1.000000e+00 : f32
    %31 = vector.broadcast %cst_14 : f32 to vector<8x32xf32>
    %32 = arith.addf %31, %30 : vector<8x32xf32>
    %cst_15 = arith.constant 1.000000e+00 : f32
    %33 = vector.broadcast %cst_15 : f32 to vector<8x32xf32>
    %34 = arith.divf %33, %32 : vector<8x32xf32>
    %35 = vector.extract_strided_slice %18 {offsets = [0, 64], sizes = [8, 32], strides = [1, 1]} : vector<8x128xf32> to vector<8x32xf32>
    %36 = math.tanh %35 : vector<8x32xf32>
    %37 = vector.extract_strided_slice %18 {offsets = [0, 96], sizes = [8, 32], strides = [1, 1]} : vector<8x128xf32> to vector<8x32xf32>
    %cst_16 = arith.constant 0.000000e+00 : f32
    %38 = vector.broadcast %cst_16 : f32 to vector<8x32xf32>
    %39 = arith.subf %38, %37 : vector<8x32xf32>
    %40 = math.exp %39 : vector<8x32xf32>
    %cst_17 = arith.constant 1.000000e+00 : f32
    %41 = vector.broadcast %cst_17 : f32 to vector<8x32xf32>
    %42 = arith.addf %41, %40 : vector<8x32xf32>
    %cst_18 = arith.constant 1.000000e+00 : f32
    %43 = vector.broadcast %cst_18 : f32 to vector<8x32xf32>
    %44 = arith.divf %43, %42 : vector<8x32xf32>
    %45 = arith.mulf %34, %6 : vector<8x32xf32>
    %46 = arith.mulf %26, %36 : vector<8x32xf32>
    %47 = arith.addf %45, %46 : vector<8x32xf32>
    %48 = math.tanh %47 : vector<8x32xf32>
    %49 = arith.mulf %44, %48 : vector<8x32xf32>
    %50 = arith.truncf %49 : vector<8x32xf32> to vector<8x32xbf16>
    %c0_19 = arith.constant 0 : index
    %51 = arith.index_cast %11 : i32 to index
    %c0_20 = arith.constant 0 : index
    %c0_21 = arith.constant 0 : index
    %52 = vector.load %arg4[%c0_19, %51, %c0_20, %c0_21] : memref<1x4x8x32xbf16, #tpu.memory_space<vmem>>, vector<1x1x8x32xbf16>
    %53 = vector.shape_cast %52 : vector<1x1x8x32xbf16> to vector<8x32xbf16>
    %54 = vector.shape_cast %50 : vector<8x32xbf16> to vector<1x1x8x32xbf16>
    tpu.vector_store %arg4[%c0_19, %51, %c0_20, %c0_21], %54 {strides = array<i32>} : memref<1x4x8x32xbf16, #tpu.memory_space<vmem>>, vector<1x1x8x32xbf16>,
    %c1_i32_22 = arith.constant 1 : i32
    %c1_i32_23 = arith.constant 1 : i32
    %55 = arith.subi %c1_i32_23, %arg0 : i32
    %56 = arith.muli %55, %c1_i32_22 : i32
    %c3_i32_24 = arith.constant 3 : i32
    %57 = arith.subi %c3_i32_24, %c1_i32_22 : i32
    %58 = arith.muli %arg0, %57 : i32
    %59 = arith.addi %56, %58 : i32
    %60 = arith.index_cast %59 : i32 to index
    %c0_25 = arith.constant 0 : index
    %c0_26 = arith.constant 0 : index
    %61 = vector.load %arg2[%60, %c0_25, %c0_26] : memref<4x8x128xbf16, #tpu.memory_space<vmem>>, vector<1x8x128xbf16>
    %62 = vector.shape_cast %61 : vector<1x8x128xbf16> to vector<8x128xbf16>
    %63 = arith.extf %62 : vector<8x128xbf16> to vector<8x128xf32>
    %64 = arith.truncf %49 : vector<8x32xf32> to vector<8x32xbf16>
    %cst_27 = arith.constant dense<0.000000e+00> : vector<8x128xf32>
    %65 = tpu.matmul %64, %4, %cst_27 {dimension_numbers = #tpu.dot_dimension_numbers<[1], [0], [0], [1], [0, 0, 1, 1], [], []>} : vector<8x32xbf16>, vector<32x128xbf16>, vector<8x128xf32> -> vector<8x128xf32>
    %66 = arith.addf %63, %65 : vector<8x128xf32>
    %67 = vector.extract_strided_slice %66 {offsets = [0, 0], sizes = [8, 32], strides = [1, 1]} : vector<8x128xf32> to vector<8x32xf32>
    %cst_28 = arith.constant 0.000000e+00 : f32
    %68 = vector.broadcast %cst_28 : f32 to vector<8x32xf32>
    %69 = arith.subf %68, %67 : vector<8x32xf32>
    %70 = math.exp %69 : vector<8x32xf32>
    %cst_29 = arith.constant 1.000000e+00 : f32
    %71 = vector.broadcast %cst_29 : f32 to vector<8x32xf32>
    %72 = arith.addf %71, %70 : vector<8x32xf32>
    %cst_30 = arith.constant 1.000000e+00 : f32
    %73 = vector.broadcast %cst_30 : f32 to vector<8x32xf32>
    %74 = arith.divf %73, %72 : vector<8x32xf32>
    %75 = vector.extract_strided_slice %66 {offsets = [0, 32], sizes = [8, 32], strides = [1, 1]} : vector<8x128xf32> to vector<8x32xf32>
    %cst_31 = arith.constant 0.000000e+00 : f32
    %76 = vector.broadcast %cst_31 : f32 to vector<8x32xf32>
    %77 = arith.subf %76, %75 : vector<8x32xf32>
    %78 = math.exp %77 : vector<8x32xf32>
    %cst_32 = arith.constant 1.000000e+00 : f32
    %79 = vector.broadcast %cst_32 : f32 to vector<8x32xf32>
    %80 = arith.addf %79, %78 : vector<8x32xf32>
    %cst_33 = arith.constant 1.000000e+00 : f32
    %81 = vector.broadcast %cst_33 : f32 to vector<8x32xf32>
    %82 = arith.divf %81, %80 : vector<8x32xf32>
    %83 = vector.extract_strided_slice %66 {offsets = [0, 64], sizes = [8, 32], strides = [1, 1]} : vector<8x128xf32> to vector<8x32xf32>
    %84 = math.tanh %83 : vector<8x32xf32>
    %85 = vector.extract_strided_slice %66 {offsets = [0, 96], sizes = [8, 32], strides = [1, 1]} : vector<8x128xf32> to vector<8x32xf32>
    %cst_34 = arith.constant 0.000000e+00 : f32
    %86 = vector.broadcast %cst_34 : f32 to vector<8x32xf32>
    %87 = arith.subf %86, %85 : vector<8x32xf32>
    %88 = math.exp %87 : vector<8x32xf32>
    %cst_35 = arith.constant 1.000000e+00 : f32
    %89 = vector.broadcast %cst_35 : f32 to vector<8x32xf32>
    %90 = arith.addf %89, %88 : vector<8x32xf32>
    %cst_36 = arith.constant 1.000000e+00 : f32
    %91 = vector.broadcast %cst_36 : f32 to vector<8x32xf32>
    %92 = arith.divf %91, %90 : vector<8x32xf32>
    %93 = arith.mulf %82, %47 : vector<8x32xf32>
    %94 = arith.mulf %74, %84 : vector<8x32xf32>
    %95 = arith.addf %93, %94 : vector<8x32xf32>
    %96 = math.tanh %95 : vector<8x32xf32>
    %97 = arith.mulf %92, %96 : vector<8x32xf32>
    %98 = arith.truncf %97 : vector<8x32xf32> to vector<8x32xbf16>
    %c0_37 = arith.constant 0 : index
    %99 = arith.index_cast %59 : i32 to index
    %c0_38 = arith.constant 0 : index
    %c0_39 = arith.constant 0 : index
    %100 = vector.load %arg4[%c0_37, %99, %c0_38, %c0_39] : memref<1x4x8x32xbf16, #tpu.memory_space<vmem>>, vector<1x1x8x32xbf16>
    %101 = vector.shape_cast %100 : vector<1x1x8x32xbf16> to vector<8x32xbf16>
    %102 = vector.shape_cast %98 : vector<8x32xbf16> to vector<1x1x8x32xbf16>
    tpu.vector_store %arg4[%c0_37, %99, %c0_38, %c0_39], %102 {strides = array<i32>} : memref<1x4x8x32xbf16, #tpu.memory_space<vmem>>, vector<1x1x8x32xbf16>,
    %c2_i32 = arith.constant 2 : i32
    %c1_i32_40 = arith.constant 1 : i32
    %103 = arith.subi %c1_i32_40, %arg0 : i32
    %104 = arith.muli %103, %c2_i32 : i32
    %c3_i32_41 = arith.constant 3 : i32
    %105 = arith.subi %c3_i32_41, %c2_i32 : i32
    %106 = arith.muli %arg0, %105 : i32
    %107 = arith.addi %104, %106 : i32
    %108 = arith.index_cast %107 : i32 to index
    %c0_42 = arith.constant 0 : index
    %c0_43 = arith.constant 0 : index
    %109 = vector.load %arg2[%108, %c0_42, %c0_43] : memref<4x8x128xbf16, #tpu.memory_space<vmem>>, vector<1x8x128xbf16>
    %110 = vector.shape_cast %109 : vector<1x8x128xbf16> to vector<8x128xbf16>
    %111 = arith.extf %110 : vector<8x128xbf16> to vector<8x128xf32>
    %112 = arith.truncf %97 : vector<8x32xf32> to vector<8x32xbf16>
    %cst_44 = arith.constant dense<0.000000e+00> : vector<8x128xf32>
    %113 = tpu.matmul %112, %4, %cst_44 {dimension_numbers = #tpu.dot_dimension_numbers<[1], [0], [0], [1], [0, 0, 1, 1], [], []>} : vector<8x32xbf16>, vector<32x128xbf16>, vector<8x128xf32> -> vector<8x128xf32>
    %114 = arith.addf %111, %113 : vector<8x128xf32>
    %115 = vector.extract_strided_slice %114 {offsets = [0, 0], sizes = [8, 32], strides = [1, 1]} : vector<8x128xf32> to vector<8x32xf32>
    %cst_45 = arith.constant 0.000000e+00 : f32
    %116 = vector.broadcast %cst_45 : f32 to vector<8x32xf32>
    %117 = arith.subf %116, %115 : vector<8x32xf32>
    %118 = math.exp %117 : vector<8x32xf32>
    %cst_46 = arith.constant 1.000000e+00 : f32
    %119 = vector.broadcast %cst_46 : f32 to vector<8x32xf32>
    %120 = arith.addf %119, %118 : vector<8x32xf32>
    %cst_47 = arith.constant 1.000000e+00 : f32
    %121 = vector.broadcast %cst_47 : f32 to vector<8x32xf32>
    %122 = arith.divf %121, %120 : vector<8x32xf32>
    %123 = vector.extract_strided_slice %114 {offsets = [0, 32], sizes = [8, 32], strides = [1, 1]} : vector<8x128xf32> to vector<8x32xf32>
    %cst_48 = arith.constant 0.000000e+00 : f32
    %124 = vector.broadcast %cst_48 : f32 to vector<8x32xf32>
    %125 = arith.subf %124, %123 : vector<8x32xf32>
    %126 = math.exp %125 : vector<8x32xf32>
    %cst_49 = arith.constant 1.000000e+00 : f32
    %127 = vector.broadcast %cst_49 : f32 to vector<8x32xf32>
    %128 = arith.addf %127, %126 : vector<8x32xf32>
    %cst_50 = arith.constant 1.000000e+00 : f32
    %129 = vector.broadcast %cst_50 : f32 to vector<8x32xf32>
    %130 = arith.divf %129, %128 : vector<8x32xf32>
    %131 = vector.extract_strided_slice %114 {offsets = [0, 64], sizes = [8, 32], strides = [1, 1]} : vector<8x128xf32> to vector<8x32xf32>
    %132 = math.tanh %131 : vector<8x32xf32>
    %133 = vector.extract_strided_slice %114 {offsets = [0, 96], sizes = [8, 32], strides = [1, 1]} : vector<8x128xf32> to vector<8x32xf32>
    %cst_51 = arith.constant 0.000000e+00 : f32
    %134 = vector.broadcast %cst_51 : f32 to vector<8x32xf32>
    %135 = arith.subf %134, %133 : vector<8x32xf32>
    %136 = math.exp %135 : vector<8x32xf32>
    %cst_52 = arith.constant 1.000000e+00 : f32
    %137 = vector.broadcast %cst_52 : f32 to vector<8x32xf32>
    %138 = arith.addf %137, %136 : vector<8x32xf32>
    %cst_53 = arith.constant 1.000000e+00 : f32
    %139 = vector.broadcast %cst_53 : f32 to vector<8x32xf32>
    %140 = arith.divf %139, %138 : vector<8x32xf32>
    %141 = arith.mulf %130, %95 : vector<8x32xf32>
    %142 = arith.mulf %122, %132 : vector<8x32xf32>
    %143 = arith.addf %141, %142 : vector<8x32xf32>
    %144 = math.tanh %143 : vector<8x32xf32>
    %145 = arith.mulf %140, %144 : vector<8x32xf32>
    %146 = arith.truncf %145 : vector<8x32xf32> to vector<8x32xbf16>
    %c0_54 = arith.constant 0 : index
    %147 = arith.index_cast %107 : i32 to index
    %c0_55 = arith.constant 0 : index
    %c0_56 = arith.constant 0 : index
    %148 = vector.load %arg4[%c0_54, %147, %c0_55, %c0_56] : memref<1x4x8x32xbf16, #tpu.memory_space<vmem>>, vector<1x1x8x32xbf16>
    %149 = vector.shape_cast %148 : vector<1x1x8x32xbf16> to vector<8x32xbf16>
    %150 = vector.shape_cast %146 : vector<8x32xbf16> to vector<1x1x8x32xbf16>
    tpu.vector_store %arg4[%c0_54, %147, %c0_55, %c0_56], %150 {strides = array<i32>} : memref<1x4x8x32xbf16, #tpu.memory_space<vmem>>, vector<1x1x8x32xbf16>,
    %c3_i32_57 = arith.constant 3 : i32
    %c1_i32_58 = arith.constant 1 : i32
    %151 = arith.subi %c1_i32_58, %arg0 : i32
    %152 = arith.muli %151, %c3_i32_57 : i32
    %c3_i32_59 = arith.constant 3 : i32
    %153 = arith.subi %c3_i32_59, %c3_i32_57 : i32
    %154 = arith.muli %arg0, %153 : i32
    %155 = arith.addi %152, %154 : i32
    %156 = arith.index_cast %155 : i32 to index
    %c0_60 = arith.constant 0 : index
    %c0_61 = arith.constant 0 : index
    %157 = vector.load %arg2[%156, %c0_60, %c0_61] : memref<4x8x128xbf16, #tpu.memory_space<vmem>>, vector<1x8x128xbf16>
    %158 = vector.shape_cast %157 : vector<1x8x128xbf16> to vector<8x128xbf16>
    %159 = arith.extf %158 : vector<8x128xbf16> to vector<8x128xf32>
    %160 = arith.truncf %145 : vector<8x32xf32> to vector<8x32xbf16>
    %cst_62 = arith.constant dense<0.000000e+00> : vector<8x128xf32>
    %161 = tpu.matmul %160, %4, %cst_62 {dimension_numbers = #tpu.dot_dimension_numbers<[1], [0], [0], [1], [0, 0, 1, 1], [], []>} : vector<8x32xbf16>, vector<32x128xbf16>, vector<8x128xf32> -> vector<8x128xf32>
    %162 = arith.addf %159, %161 : vector<8x128xf32>
    %163 = vector.extract_strided_slice %162 {offsets = [0, 0], sizes = [8, 32], strides = [1, 1]} : vector<8x128xf32> to vector<8x32xf32>
    %cst_63 = arith.constant 0.000000e+00 : f32
    %164 = vector.broadcast %cst_63 : f32 to vector<8x32xf32>
    %165 = arith.subf %164, %163 : vector<8x32xf32>
    %166 = math.exp %165 : vector<8x32xf32>
    %cst_64 = arith.constant 1.000000e+00 : f32
    %167 = vector.broadcast %cst_64 : f32 to vector<8x32xf32>
    %168 = arith.addf %167, %166 : vector<8x32xf32>
    %cst_65 = arith.constant 1.000000e+00 : f32
    %169 = vector.broadcast %cst_65 : f32 to vector<8x32xf32>
    %170 = arith.divf %169, %168 : vector<8x32xf32>
    %171 = vector.extract_strided_slice %162 {offsets = [0, 32], sizes = [8, 32], strides = [1, 1]} : vector<8x128xf32> to vector<8x32xf32>
    %cst_66 = arith.constant 0.000000e+00 : f32
    %172 = vector.broadcast %cst_66 : f32 to vector<8x32xf32>
    %173 = arith.subf %172, %171 : vector<8x32xf32>
    %174 = math.exp %173 : vector<8x32xf32>
    %cst_67 = arith.constant 1.000000e+00 : f32
    %175 = vector.broadcast %cst_67 : f32 to vector<8x32xf32>
    %176 = arith.addf %175, %174 : vector<8x32xf32>
    %cst_68 = arith.constant 1.000000e+00 : f32
    %177 = vector.broadcast %cst_68 : f32 to vector<8x32xf32>
    %178 = arith.divf %177, %176 : vector<8x32xf32>
    %179 = vector.extract_strided_slice %162 {offsets = [0, 64], sizes = [8, 32], strides = [1, 1]} : vector<8x128xf32> to vector<8x32xf32>
    %180 = math.tanh %179 : vector<8x32xf32>
    %181 = vector.extract_strided_slice %162 {offsets = [0, 96], sizes = [8, 32], strides = [1, 1]} : vector<8x128xf32> to vector<8x32xf32>
    %cst_69 = arith.constant 0.000000e+00 : f32
    %182 = vector.broadcast %cst_69 : f32 to vector<8x32xf32>
    %183 = arith.subf %182, %181 : vector<8x32xf32>
    %184 = math.exp %183 : vector<8x32xf32>
    %cst_70 = arith.constant 1.000000e+00 : f32
    %185 = vector.broadcast %cst_70 : f32 to vector<8x32xf32>
    %186 = arith.addf %185, %184 : vector<8x32xf32>
    %cst_71 = arith.constant 1.000000e+00 : f32
    %187 = vector.broadcast %cst_71 : f32 to vector<8x32xf32>
    %188 = arith.divf %187, %186 : vector<8x32xf32>
    %189 = arith.mulf %178, %143 : vector<8x32xf32>
    %190 = arith.mulf %170, %180 : vector<8x32xf32>
    %191 = arith.addf %189, %190 : vector<8x32xf32>
    %192 = math.tanh %191 : vector<8x32xf32>
    %193 = arith.mulf %188, %192 : vector<8x32xf32>
    %194 = arith.truncf %193 : vector<8x32xf32> to vector<8x32xbf16>
    %c0_72 = arith.constant 0 : index
    %195 = arith.index_cast %155 : i32 to index
    %c0_73 = arith.constant 0 : index
    %c0_74 = arith.constant 0 : index
    %196 = vector.load %arg4[%c0_72, %195, %c0_73, %c0_74] : memref<1x4x8x32xbf16, #tpu.memory_space<vmem>>, vector<1x1x8x32xbf16>
    %197 = vector.shape_cast %196 : vector<1x1x8x32xbf16> to vector<8x32xbf16>
    %198 = vector.shape_cast %194 : vector<8x32xbf16> to vector<1x1x8x32xbf16>
    tpu.vector_store %arg4[%c0_72, %195, %c0_73, %c0_74], %198 {strides = array<i32>} : memref<1x4x8x32xbf16, #tpu.memory_space<vmem>>, vector<1x1x8x32xbf16>,
    %c4_i32 = arith.constant 4 : i32
    %c0_75 = arith.constant 0 : index
    %c0_76 = arith.constant 0 : index
    %199 = vector.load %arg5[%c0_75, %c0_76] : memref<8x32xf32, #tpu.memory_space<vmem>>, vector<8x32xf32>
    tpu.vector_store %arg5[%c0_75, %c0_76], %193 {strides = array<i32>} : memref<8x32xf32, #tpu.memory_space<vmem>>, vector<8x32xf32>,
    %c0_77 = arith.constant 0 : index
    %c0_78 = arith.constant 0 : index
    %200 = vector.load %arg6[%c0_77, %c0_78] : memref<8x32xf32, #tpu.memory_space<vmem>>, vector<8x32xf32>
    tpu.vector_store %arg6[%c0_77, %c0_78], %191 {strides = array<i32>} : memref<8x32xf32, #tpu.memory_space<vmem>>, vector<8x32xf32>,
    return
  }
  func.func @transform_0(%arg0: i32, %arg1: i32) -> (i32, i32, i32) {
    %c1_i32 = arith.constant 1 : i32
    %0 = arith.subi %c1_i32, %arg0 : i32
    %1 = arith.muli %0, %arg1 : i32
    %c0_i32 = arith.constant 0 : i32
    %2 = arith.subi %c0_i32, %arg1 : i32
    %3 = arith.muli %arg0, %2 : i32
    %4 = arith.addi %1, %3 : i32
    %c0_i32_0 = arith.constant 0 : i32
    %c0_i32_1 = arith.constant 0 : i32
    return %4, %c0_i32_0, %arg0 : i32, i32, i32
  }
  func.func @transform_1(%arg0: i32, %arg1: i32) -> (i32, i32, i32) {
    %c0_i32 = arith.constant 0 : i32
    %c0_i32_0 = arith.constant 0 : i32
    %c0_i32_1 = arith.constant 0 : i32
    return %arg0, %c0_i32, %c0_i32_0 : i32, i32, i32
  }
  func.func @transform_2(%arg0: i32, %arg1: i32) -> (i32, i32, i32, i32) {
    %c1_i32 = arith.constant 1 : i32
    %0 = arith.subi %c1_i32, %arg0 : i32
    %1 = arith.muli %0, %arg1 : i32
    %c0_i32 = arith.constant 0 : i32
    %2 = arith.subi %c0_i32, %arg1 : i32
    %3 = arith.muli %arg0, %2 : i32
    %4 = arith.addi %1, %3 : i32
    %c0_i32_0 = arith.constant 0 : i32
    %c0_i32_1 = arith.constant 0 : i32
    %c0_i32_2 = arith.constant 0 : i32
    return %arg0, %4, %c0_i32_0, %c0_i32_1 : i32, i32, i32, i32
  }
}

module attributes {stable_mosaic.version = 11 : i64} {
  func.func @_matmul_bias_kernel(%arg0: i32, %arg1: i32, %arg2: memref<32x32xbf16, #tpu.memory_space<vmem>>, %arg3: memref<32x256xbf16, #tpu.memory_space<vmem>>, %arg4: memref<1x256xf32, #tpu.memory_space<vmem>>, %arg5: memref<32x256xbf16, #tpu.memory_space<vmem>>) attributes {dimension_semantics = [#tpu.dimension_semantics<parallel>, #tpu.dimension_semantics<parallel>], iteration_bounds = array<i64: 1, 1>, scalar_prefetch = 0 : i64, scratch_operands = 0 : i64, tpu.core_type = #tpu.core_type<tc>, window_params = [{transform_indices = @transform_0, window_bounds = array<i64: 32, 32>}, {transform_indices = @transform_1, window_bounds = array<i64: 32, 256>}, {transform_indices = @transform_2, window_bounds = array<i64: 1, 256>}, {transform_indices = @transform_3, window_bounds = array<i64: 32, 256>}]} {
    %c0 = arith.constant 0 : index
    %c0_0 = arith.constant 0 : index
    %0 = vector.load %arg2[%c0, %c0_0] : memref<32x32xbf16, #tpu.memory_space<vmem>>, vector<32x32xbf16>
    %c0_1 = arith.constant 0 : index
    %c0_2 = arith.constant 0 : index
    %1 = vector.load %arg3[%c0_1, %c0_2] : memref<32x256xbf16, #tpu.memory_space<vmem>>, vector<32x256xbf16>
    %cst = arith.constant dense<0.000000e+00> : vector<32x256xf32>
    %2 = tpu.matmul %0, %1, %cst {dimension_numbers = #tpu.dot_dimension_numbers<[1], [0], [0], [1], [0, 0, 1, 1], [], []>} : vector<32x32xbf16>, vector<32x256xbf16>, vector<32x256xf32> -> vector<32x256xf32>
    %c0_3 = arith.constant 0 : index
    %c0_4 = arith.constant 0 : index
    %3 = vector.load %arg4[%c0_3, %c0_4] : memref<1x256xf32, #tpu.memory_space<vmem>>, vector<1x256xf32>
    %4 = vector.broadcast %3 : vector<1x256xf32> to vector<32x256xf32>
    %5 = arith.addf %2, %4 : vector<32x256xf32>
    %6 = arith.truncf %5 : vector<32x256xf32> to vector<32x256xbf16>
    %c0_5 = arith.constant 0 : index
    %c0_6 = arith.constant 0 : index
    %7 = vector.load %arg5[%c0_5, %c0_6] : memref<32x256xbf16, #tpu.memory_space<vmem>>, vector<32x256xbf16>
    tpu.vector_store %arg5[%c0_5, %c0_6], %6 {strides = array<i32>} : memref<32x256xbf16, #tpu.memory_space<vmem>>, vector<32x256xbf16>,
    return
  }
  func.func @transform_0(%arg0: i32, %arg1: i32) -> (i32, i32) {
    %c0_i32 = arith.constant 0 : i32
    %c0_i32_0 = arith.constant 0 : i32
    return %arg0, %c0_i32 : i32, i32
  }
  func.func @transform_1(%arg0: i32, %arg1: i32) -> (i32, i32) {
    %c0_i32 = arith.constant 0 : i32
    %c0_i32_0 = arith.constant 0 : i32
    return %c0_i32, %arg1 : i32, i32
  }
  func.func @transform_2(%arg0: i32, %arg1: i32) -> (i32, i32) {
    %c0_i32 = arith.constant 0 : i32
    %c0_i32_0 = arith.constant 0 : i32
    return %c0_i32, %arg1 : i32, i32
  }
  func.func @transform_3(%arg0: i32, %arg1: i32) -> (i32, i32) {
    %c0_i32 = arith.constant 0 : i32
    return %arg0, %arg1 : i32, i32
  }
}

module attributes {stable_mosaic.version = 11 : i64} {
  func.func @_matmul_bias_kernel(%arg0: i32, %arg1: i32, %arg2: memref<32x64xbf16, #tpu.memory_space<vmem>>, %arg3: memref<64x128xbf16, #tpu.memory_space<vmem>>, %arg4: memref<1x128xf32, #tpu.memory_space<vmem>>, %arg5: memref<32x128xbf16, #tpu.memory_space<vmem>>) attributes {dimension_semantics = [#tpu.dimension_semantics<parallel>, #tpu.dimension_semantics<parallel>], iteration_bounds = array<i64: 1, 1>, scalar_prefetch = 0 : i64, scratch_operands = 0 : i64, tpu.core_type = #tpu.core_type<tc>, window_params = [{transform_indices = @transform_0, window_bounds = array<i64: 32, 64>}, {transform_indices = @transform_1, window_bounds = array<i64: 64, 128>}, {transform_indices = @transform_2, window_bounds = array<i64: 1, 128>}, {transform_indices = @transform_3, window_bounds = array<i64: 32, 128>}]} {
    %c0 = arith.constant 0 : index
    %c0_0 = arith.constant 0 : index
    %0 = vector.load %arg2[%c0, %c0_0] : memref<32x64xbf16, #tpu.memory_space<vmem>>, vector<32x64xbf16>
    %c0_1 = arith.constant 0 : index
    %c0_2 = arith.constant 0 : index
    %1 = vector.load %arg3[%c0_1, %c0_2] : memref<64x128xbf16, #tpu.memory_space<vmem>>, vector<64x128xbf16>
    %cst = arith.constant dense<0.000000e+00> : vector<32x128xf32>
    %2 = tpu.matmul %0, %1, %cst {dimension_numbers = #tpu.dot_dimension_numbers<[1], [0], [0], [1], [0, 0, 1, 1], [], []>} : vector<32x64xbf16>, vector<64x128xbf16>, vector<32x128xf32> -> vector<32x128xf32>
    %c0_3 = arith.constant 0 : index
    %c0_4 = arith.constant 0 : index
    %3 = vector.load %arg4[%c0_3, %c0_4] : memref<1x128xf32, #tpu.memory_space<vmem>>, vector<1x128xf32>
    %4 = vector.broadcast %3 : vector<1x128xf32> to vector<32x128xf32>
    %5 = arith.addf %2, %4 : vector<32x128xf32>
    %6 = arith.truncf %5 : vector<32x128xf32> to vector<32x128xbf16>
    %c0_5 = arith.constant 0 : index
    %c0_6 = arith.constant 0 : index
    %7 = vector.load %arg5[%c0_5, %c0_6] : memref<32x128xbf16, #tpu.memory_space<vmem>>, vector<32x128xbf16>
    tpu.vector_store %arg5[%c0_5, %c0_6], %6 {strides = array<i32>} : memref<32x128xbf16, #tpu.memory_space<vmem>>, vector<32x128xbf16>,
    return
  }
  func.func @transform_0(%arg0: i32, %arg1: i32) -> (i32, i32) {
    %c0_i32 = arith.constant 0 : i32
    %c0_i32_0 = arith.constant 0 : i32
    return %arg0, %c0_i32 : i32, i32
  }
  func.func @transform_1(%arg0: i32, %arg1: i32) -> (i32, i32) {
    %c0_i32 = arith.constant 0 : i32
    %c0_i32_0 = arith.constant 0 : i32
    return %c0_i32, %arg1 : i32, i32
  }
  func.func @transform_2(%arg0: i32, %arg1: i32) -> (i32, i32) {
    %c0_i32 = arith.constant 0 : i32
    %c0_i32_0 = arith.constant 0 : i32
    return %c0_i32, %arg1 : i32, i32
  }
  func.func @transform_3(%arg0: i32, %arg1: i32) -> (i32, i32) {
    %c0_i32 = arith.constant 0 : i32
    return %arg0, %arg1 : i32, i32
  }
}

module attributes {stable_mosaic.version = 11 : i64} {
  func.func @_matmul_bias_kernel(%arg0: i32, %arg1: i32, %arg2: memref<32x32xbf16, #tpu.memory_space<vmem>>, %arg3: memref<32x128xbf16, #tpu.memory_space<vmem>>, %arg4: memref<1x128xf32, #tpu.memory_space<vmem>>, %arg5: memref<32x128xf32, #tpu.memory_space<vmem>>) attributes {dimension_semantics = [#tpu.dimension_semantics<parallel>, #tpu.dimension_semantics<parallel>], iteration_bounds = array<i64: 1, 1>, scalar_prefetch = 0 : i64, scratch_operands = 0 : i64, tpu.core_type = #tpu.core_type<tc>, window_params = [{transform_indices = @transform_0, window_bounds = array<i64: 32, 32>}, {transform_indices = @transform_1, window_bounds = array<i64: 32, 128>}, {transform_indices = @transform_2, window_bounds = array<i64: 1, 128>}, {transform_indices = @transform_3, window_bounds = array<i64: 32, 128>}]} {
    %c0 = arith.constant 0 : index
    %c0_0 = arith.constant 0 : index
    %0 = vector.load %arg2[%c0, %c0_0] : memref<32x32xbf16, #tpu.memory_space<vmem>>, vector<32x32xbf16>
    %c0_1 = arith.constant 0 : index
    %c0_2 = arith.constant 0 : index
    %1 = vector.load %arg3[%c0_1, %c0_2] : memref<32x128xbf16, #tpu.memory_space<vmem>>, vector<32x128xbf16>
    %cst = arith.constant dense<0.000000e+00> : vector<32x128xf32>
    %2 = tpu.matmul %0, %1, %cst {dimension_numbers = #tpu.dot_dimension_numbers<[1], [0], [0], [1], [0, 0, 1, 1], [], []>} : vector<32x32xbf16>, vector<32x128xbf16>, vector<32x128xf32> -> vector<32x128xf32>
    %c0_3 = arith.constant 0 : index
    %c0_4 = arith.constant 0 : index
    %3 = vector.load %arg4[%c0_3, %c0_4] : memref<1x128xf32, #tpu.memory_space<vmem>>, vector<1x128xf32>
    %4 = vector.broadcast %3 : vector<1x128xf32> to vector<32x128xf32>
    %5 = arith.addf %2, %4 : vector<32x128xf32>
    %c0_5 = arith.constant 0 : index
    %c0_6 = arith.constant 0 : index
    %6 = vector.load %arg5[%c0_5, %c0_6] : memref<32x128xf32, #tpu.memory_space<vmem>>, vector<32x128xf32>
    tpu.vector_store %arg5[%c0_5, %c0_6], %5 {strides = array<i32>} : memref<32x128xf32, #tpu.memory_space<vmem>>, vector<32x128xf32>,
    return
  }
  func.func @transform_0(%arg0: i32, %arg1: i32) -> (i32, i32) {
    %c0_i32 = arith.constant 0 : i32
    %c0_i32_0 = arith.constant 0 : i32
    return %arg0, %c0_i32 : i32, i32
  }
  func.func @transform_1(%arg0: i32, %arg1: i32) -> (i32, i32) {
    %c0_i32 = arith.constant 0 : i32
    %c0_i32_0 = arith.constant 0 : i32
    return %c0_i32, %arg1 : i32, i32
  }
  func.func @transform_2(%arg0: i32, %arg1: i32) -> (i32, i32) {
    %c0_i32 = arith.constant 0 : i32
    %c0_i32_0 = arith.constant 0 : i32
    return %c0_i32, %arg1 : i32, i32
  }
  func.func @transform_3(%arg0: i32, %arg1: i32) -> (i32, i32) {
    %c0_i32 = arith.constant 0 : i32
    return %arg0, %arg1 : i32, i32
  }
}

</mosaic_0001>

<bundles_post_ra>
// kernel: _lambda_.7
= control target key start
LH: loop header
LB: loop body
LE: loop exit
PB: predicated region body
PF: predicated region fallthrough
CT: control target
= control target key end

     0   :  { %v186_v1 = vmov 0   ;;  %vm65_vm0 = vcmask 261120   ;;  %v25_v7 = vlaneseq  ;;  %s240_s1 = inlined_call_operand.vmem [shape: bf16[32,256], index: 1, kind: input, shape index: {}]   ;;  %s241_s0 = inlined_call_operand.vmem [shape: bf16[32,32], index: 0, kind: input, shape index: {}]   ;;  %s242_s2 = inlined_call_operand.vmem [shape: f32[1,256], index: 2, kind: input, shape index: {}]   ;;  %s243_s3 = inlined_call_operand.vmem [shape: bf16[32,256], index: 3, kind: output, shape index: {}]  }
   0x1   :  { %v178_v0 = vld [vmem:[%s240_s1 + $0x4] ss:$8 sps:$4 sm:$0xff]   ;;  %104 = vmatprep.mubr.bf16.mxu0 %v186_v1  ;;  %114 = vmatprep.mubr.bf16.mxu1 %v186_v1  ;;  %v180_v2 = vld [vmem:[%s240_s1] ss:$8 sps:$4 sm:$0xff]   ;;  %v181_v3 = vld [vmem:[%s240_s1 + $0x14] ss:$8 sps:$4 sm:$0xff]  }
   0x2   :  { %72 = vmatprep.subr.bf16.mxu0 %v178_v0  ;;  %173 = vmatprep.subr.bf16.mxu1 %v178_v0  ;;  %v183_v4 = vld [vmem:[%s240_s1 + $0x10] ss:$8 sps:$4 sm:$0xff]   ;;  %v184_v5 = vld [vmem:[%s241_s0] sm:$0xff]   ;;  %v185_v6 = vld [vmem:[%s241_s0 + $0x8] sm:$0xff]   ;;  %v26_v8 = vshrl.u32 %v25_v7, 7 }
   0x3   :  { %73 = vmatpush1.bf16.msra.mxu0 %v180_v2  ;;  %175 = vmatpush1.bf16.msra.mxu1 %v180_v2  ;;  %v23_v10 = vld [vmem:[%s242_s2] sm:$0x3] }
   0x4   :  { %74 = vmatprep.subr.bf16.mxu0 %v181_v3  ;;  %174 = vmatprep.subr.bf16.mxu1 %v181_v3  ;;  %v27_v9 = vsub.s32 0, %v26_v8  ;;  %v31_v11 = vsub.s32 1, %v26_v8 }
   0x6   :  { %v28_v12 = vrot.slane %v23_v10, %v27_v9  ;;  %v32_v13 = vrot.slane %v23_v10, %v31_v11 }
   0x7   :  { %75 = vmatpush1.bf16.msra.mxu0 %v183_v4  ;;  %176 = vmatpush1.bf16.msra.mxu1 %v183_v4 }
   0xa   :  { %163 = vmatmul.mubr.msk.bf16.vlgmr.msra.gmra.mrb[0].mxu0 %vm65_vm0, %v184_v5  ;;  %164 = vmatmul.mubr.msk.bf16.vlgmr.msra.gmra.mrb[0].mxu1 %vm65_vm0, %v185_v6 }
  0xdd   :  { %v106_v14 = vpop.f32.mrb[0].mxu0  ;;  %v116_v15 = vpop.f32.mrb[0].mxu1 }
  0xde   :  { %v107_v16 = vadd.f32 %v106_v14, %v28_v12  ;;  %v117_v17 = vadd.f32 %v116_v15, %v28_v12  ;;  %v108_v18 = vpop.f32.mrb[1].mxu0  ;;  %v118_v19 = vpop.f32.mrb[1].mxu1 }
  0xdf   :  { %v109_v20 = vadd.f32 %v108_v18, %v32_v13  ;;  %v119_v21 = vadd.f32 %v118_v19, %v32_v13  ;;  %v110_v22 = vpop.f32.mrb[2].mxu0  ;;  %v120_v23 = vpop.f32.mrb[2].mxu1 }
  0xe0   :  { %v111_v24 = vadd.f32 %v110_v22, %v28_v12  ;;  %v121_v25 = vadd.f32 %v120_v23, %v28_v12  ;;  %v112_v26 = vpop.f32.mrb[3].mxu0  ;;  %v122_v27 = vpop.f32.mrb[3].mxu1 }
  0xe1   :  { %v169_v28 = vpack.c.bf16 %v109_v20, %v107_v16  ;;  %v171_v29 = vpack.c.bf16 %v119_v21, %v117_v17  ;;  %v113_v30 = vadd.f32 %v112_v26, %v32_v13  ;;  %v123_v31 = vadd.f32 %v122_v27, %v32_v13 }
  0xe3   :  { %149 = vst [vmem:[%s243_s3] sm:$0xff] %v169_v28  ;;  %151 = vst [vmem:[%s243_s3 + $0x10] sm:$0xff] %v171_v29  ;;  %v170_v32 = vpack.c.bf16 %v113_v30, %v111_v24  ;;  %v172_v33 = vpack.c.bf16 %v123_v31, %v121_v25 }
  0xe5   :  { %150 = vst [vmem:[%s243_s3 + $0x8] sm:$0xff] %v170_v32  ;;  %152 = vst [vmem:[%s243_s3 + $0x18] sm:$0xff] %v172_v33 }

// kernel: _lambda_.8
= control target key start
LH: loop header
LB: loop body
LE: loop exit
PB: predicated region body
PF: predicated region fallthrough
CT: control target
= control target key end

     0   :  { %s1043_s9 = smov 0   ;;  %s1045_s10 = smov 0   ;;  %s1215_s0 = inlined_call_operand.vmem [shape: bf16[4,8,256], index: 0, kind: input, shape index: {}]   ;;  %s1216_s1 = inlined_call_operand.vmem [shape: bf16[2,32,128], index: 1, kind: input, shape index: {}]   ;;  %s1217_s2 = inlined_call_operand.vmem [shape: bf16[2,4,8,32], index: 2, kind: output, shape index: {}]  }
   0x1   :  { %s1047_s11 = smov 0   ;;  %s1049_s12 = smov 0  }
   0x2   :  { %s1051_s13 = smov 0  }
   0x3 LB: > { %s24_s14 = sadd.s32 1, %s1017_s12  ;;  %p50_p1 = scmp.ne.s32.totalorder %s1009_s10, %s1005_s9  ;;  %s1021_s13 = sphi %s1051_s13, %s12_s13   ;;  %s1017_s12 = sphi %s1049_s12, %s1221_s12   ;;  %s1013_s11 = sphi %s1047_s11, %s1220_s11   ;;  %s1009_s10 = sphi %s1045_s10, %s1219_s10   ;;  %s1005_s9 = sphi %s1043_s9, %s1218_s9  }
   0x4   : > { %p26_p0 = scmp.ge.s32.totalorder %s24_s14, 2  ;;  %p51_p2 = scmp.eq.s32.totalorder %s1021_s13, 0 }
   0x5   : > { %s43_s16 = sadd.s32 1, %s1009_s10  ;;  %p819_p5 = scmp.ge.s32.totalorder %s1021_s13, 2 }
   0x6   : > { %s1223_s14 = smov (%p26_p0, %s24_s14), 0  ;;  %p52_p3 = por %p51_p2, %p50_p1 }
   0x7   : > { %s39_s15 = ssub.s32 %s1017_s12, %s1223_s14  ;;  %140 = sbr.rel (%p819_p5) target bundleno = 21 (0x15), region = 16 }
   0x8   : > { %p41_p4 = scmp.eq.s32.totalorder %s39_s15, 0 }
   0xa   : > { %s1078_s17 = scalar_select %p41_p4, %s1009_s10, %s43_s16  }
   0xe   : > { %143 = sbr.rel (!%p52_p3) target bundleno = 21 (0x15), region = 20  ;;  %s145_s18 = sand.u32 (%p52_p3), 1, %s1009_s10  }
   0xf   : > { %s821_s19 = sshll.u32 (%p52_p3), %s1017_s12, 2  ;;  %s820_s20 = sshll.u32 (%p52_p3), %s145_s18, 4 }
  0x10   : > { %s157_s23 = scalar_lea.vmem (%p52_p3), %s1215_s0, %s821_s19  ;;  %s147_s24 = scalar_lea.vmem (%p52_p3), [#allocation4], %s820_s20 }
  0x11   : > { %v173_v0 = vld [vmem:[%s157_s23] sm:$0xf] (%p52_p3)  ;;  %v175_v1 = vld [vmem:[%s157_s23 + $0x8] sm:$0xf] (%p52_p3)  ;;  %v177_v2 = vld [vmem:[%s157_s23 + $0x10] sm:$0xf] (%p52_p3) }
  0x12   : > { %174 = vst [vmem:[%s147_s24] sm:$0xf] (%p52_p3), %v173_v0  ;;  %176 = vst [vmem:[%s147_s24 + $0x4] sm:$0xf] (%p52_p3), %v175_v1  ;;  %v179_v3 = vld [vmem:[%s157_s23 + $0x18] sm:$0xf] (%p52_p3) }
  0x13   : > { %178 = vst [vmem:[%s147_s24 + $0x8] sm:$0xf] (%p52_p3), %v177_v2  ;;  %180 = vst [vmem:[%s147_s24 + $0xc] sm:$0xf] (%p52_p3), %v179_v3 }
  0x15 PF: > { %p822_p6 = scmp.ge.s32.totalorder %s1021_s13, 1  ;;  %p218_p7 = scmp.lt.s32.totalorder %s1021_s13, 3 }
  0x17   : > { %p219_p8 = pnand %p822_p6, %p218_p7 }
  0x18   : > { %p266_p9 = scmp.lt.s32.totalorder (!%p219_p8), %s1013_s11, 1  ;;  %vm296_vm0 = vcmask (!%p219_p8), 261120   ;;  %v1023_v4 = vmov (!%p219_p8), 0.0   ;;  %vm1024_vm1 = vmmov (!%p219_p8), 0   ;;  %s225_s30 = sand.u32 (!%p219_p8), 1, %s1005_s9   ;;  %vm405_vm2 = vcmask (!%p219_p8), 257024  }
  0x19   : > { %222 = sbr.rel (%p219_p8) target bundleno = 2865 (0xb31), region = 65  ;;  %872 = vmatprep.subr.bf16.mxu0 (!%p219_p8), %v1023_v4  ;;  %876 = vmatprep.mubr.msk.bf16.mxu0 (!%p219_p8), %vm1024_vm1, %v1023_v4  ;;  %297 = vst.msk [vmem:[#allocation2] sm:$0xff] (!%p219_p8), %vm296_vm0, %v1023_v4  ;;  %298 = vst.msk [vmem:[#allocation3] sm:$0xff] (!%p219_p8), %vm296_vm0, %v1023_v4  ;;  %s823_s3 = sshll.u32 (!%p219_p8), %s225_s30, 4 }
  0x1a   : > { %880 = vmatprep.subr.bf16.mxu1 (!%p219_p8), %v1023_v4  ;;  %884 = vmatprep.mubr.msk.bf16.mxu1 (!%p219_p8), %vm1024_vm1, %v1023_v4  ;;  %s852_s4 = smul.u32 (!%p219_p8), 12, %s1013_s11  ;;  %s1118_s5 = scalar_lea.vmem (!%p219_p8), [#allocation4], %s823_s3 }
  0x1b   : > { %s1025_s7 = smov (!%p219_p8), 64   ;;  %s1026_s8 = smov (!%p219_p8), 32  }
  0x1c   : > { %s307_s6 = scalar_lea.vmem (!%p219_p8), %s1118_s5, %s852_s4 [#allocation4]  ;;  %s1136_s9 = ssub.s32 (!%p219_p8), 1, %s1013_s11 }
  0x1d   : > { %v308_v9 = vld [vmem:[%s307_s6] sm:$0xf] (!%p219_p8)  ;;  %s834_s15 = sshll.u32 (!%p219_p8), %s1013_s11, 1  ;;  %s839_s20 = sshll.u32 (!%p219_p8), %s1136_s9, 1 }
  0x1e   : > { %v309_v10 = vunpack.c.l.bf16 (!%p219_p8), %v308_v9  ;;  %s1140_s16 = sadd.s32 (!%p219_p8), %s834_s15, %s1136_s9  ;;  %s1156_s21 = sadd.s32 (!%p219_p8), %s1013_s11, %s839_s20 }
  0x1f   : > { %s835_s18 = sshll.u32 (!%p219_p8), %s1140_s16, 2  ;;  %s840_s22 = sshll.u32 (!%p219_p8), %s1156_s21, 2 }
  0x20   : > { %s1097_s25 = scalar_select %p266_p9, %s1013_s11, 1  ;;  %v303_v7 = vld [vmem:[#allocation2] sm:$0xff]  ;;  %v304_v17 = vld [vmem:[#allocation3] sm:$0xff] }
  0x21   : > { %v310_v8 = vpack.c.bf16 %v303_v7, %v303_v7  ;;  %s411_s19 = scalar_lea.vmem %s1118_s5, %s835_s18 [#allocation4]  ;;  %s497_s23 = scalar_lea.vmem %s1118_s5, %s840_s22 [#allocation4] }
  0x22   : > { %s850_s26 = sshll.u32 %s1097_s25, 4  ;;  %v412_v34 = vld [vmem:[%s411_s19] sm:$0xf]  ;;  %s857_s24 = smul.u32 12, %s1136_s9 }
  0x23   : > { %s270_s29 = scalar_lea.vmem %s1216_s1, %s850_s26  ;;  %v413_v35 = vunpack.c.l.bf16 %v412_v34  ;;  %v498_v57 = vld [vmem:[%s497_s23] sm:$0xf]  ;;  %s284_s30 = scalar_lea.vmem %s1217_s2, %s850_s26 }
  0x24   : > { %v949_v5 = vld [vmem:[%s270_s29] sm:$0xff]   ;;  %v950_v6 = vld [vmem:[%s270_s29 + $0x8] sm:$0xff]   ;;  %v499_v58 = vunpack.c.l.bf16 %v498_v57  ;;  %s582_s27 = scalar_lea.vmem %s1118_s5, %s857_s24 [#allocation4]  ;;  %s404_s3 = scalar_lea.vmem %s284_s30, %s852_s4 }
  0x25   : > { %873 = vmatpush3.bf16.msra.mxu0 %v949_v5  ;;  %881 = vmatpush3.bf16.msra.mxu1 %v949_v5  ;;  %s492_s25 = scalar_lea.vmem %s284_s30, %s835_s18  ;;  %s578_s26 = scalar_lea.vmem %s284_s30, %s840_s22 }
  0x26   : > { %874 = vmatprep.subr.bf16.mxu0 %v1023_v4  ;;  %882 = vmatprep.subr.bf16.mxu1 %v1023_v4  ;;  %s1027_s11 = smov 96   ;;  %s663_s4 = scalar_lea.vmem %s284_s30, %s857_s24 }
  0x29   : > { %875 = vmatpush3.bf16.msra.mxu0 %v950_v6  ;;  %883 = vmatpush3.bf16.msra.mxu1 %v950_v6 }
  0x2a   : > { %888 = vmatprep.subr.bf16.mxu0 %v1023_v4  ;;  %896 = vmatprep.subr.bf16.mxu1 %v1023_v4 }
  0x2c   : > { %877 = vmatmul.mubr.msk.bf16.vlgmr.msra.gmra.mrb[0].mxu0 %vm296_vm0, %v310_v8 }
  0x2d   : > { %889 = vmatpush3.bf16.msra.mxu0 %v949_v5  ;;  %892 = vmatprep.mubr.msk.bf16.mxu0 %vm1024_vm1, %v1023_v4 }
  0x2e   : > { %890 = vmatprep.subr.bf16.mxu0 %v1023_v4 }
  0x31   : > { %891 = vmatpush3.bf16.msra.mxu0 %v950_v6 }
  0xff   : > { %v361_v11 = vpop.f32.mrb[0].mxu0 }
 0x100   : > { %v367_v12 = vadd.f32 %v361_v11, %v309_v10  ;;  %v878_v13 = vpop.f32.mrb[1].mxu0 }
 0x101   : > { %v364_v14 = vpop.f32.mrb[2].mxu0 }
 0x102   : > { %951 = vtanh.f32 %v367_v12  ;;  %v879_v15 = vpop.f32.mrb[3].mxu0  ;;  %v368_v18 = vsub.f32 0.0, %v367_v12 }
 0x104   : > { %v369_v19 = vmul.f32 1.442695, %v368_v18 }
 0x106   : > { %953 = vpow2.f32 %v369_v19 }
 0x10c   : > { %v952_v16 = vpop.eup %951 }
 0x10d   : > { %381 = vrot.lane.b32.xlu0 %v952_v16, %s1025_s7  ;;  %v583_v16 = vld [vmem:[%s582_s27] sm:$0xf] }
 0x110   : > { %v954_v20 = vpop.eup %953 }
 0x111   : > { %376 = vrot.lane.b32.xlu0 %v304_v17, %s1026_s8  ;;  %v371_v21 = vadd.f32 1.0, %v954_v20  ;;  %v584_v17 = vunpack.c.l.bf16 %v583_v16 }
 0x113   : > { %955 = vrcp.f32 %v371_v21 }
 0x11d   : > { %v956_v22 = vpop.eup %955 }
 0x17f   : > { %v382_v23 = vpop.permute.xlu0 %381 }
 0x180   : > { %v384_v24 = vmul.f32 %v956_v22, %v382_v23 }
 0x182   : > { %386 = vrot.lane.b32.xlu1 %v384_v24, %s1026_s8 }
 0x183   : > { %v377_v25 = vpop.permute.xlu0 %376 }
 0x184   : > { %v379_v26 = vmul.f32 %v956_v22, %v377_v25 }
 0x1f4   : > { %v387_v27 = vpop.permute.xlu1 %386 }
 0x1f5   : > { %v389_v28 = vadd.f32 %v387_v27, %v379_v26 }
 0x1f7   : > { %957 = vtanh.f32 %v389_v28 }
 0x201   : > { %v958_v29 = vpop.eup %957 }
 0x202   : > { %392 = vrot.lane.b32.xlu1 %v958_v29, %s1025_s7 }
 0x274   : > { %v393_v30 = vpop.permute.xlu1 %392 }
 0x275   : > { %v395_v31 = vmul.f32 %v956_v22, %v393_v30 }
 0x277   : > { %v1127_v32 = vpack.c.bf16 %v395_v31, %v395_v31 }
 0x279   : > { %414 = vrot.lane.b32.xlu0 %v1127_v32, %s1026_s8 }
 0x2eb   : > { %v415_v33 = vpop.permute.xlu0 %414 }
 0x2ec   : > { %885 = vmatmul.mubr.msk.bf16.vlgmr.msra.gmra.mrb[0].mxu1 %vm296_vm0, %v415_v33 }
 0x2ed   : > { %897 = vmatpush3.bf16.msra.mxu1 %v949_v5  ;;  %900 = vmatprep.mubr.msk.bf16.mxu1 %vm1024_vm1, %v1023_v4 }
 0x2ee   : > { %898 = vmatprep.subr.bf16.mxu1 %v1023_v4 }
 0x2f1   : > { %899 = vmatpush3.bf16.msra.mxu1 %v950_v6 }
 0x3bf   : > { %v453_v36 = vpop.f32.mrb[0].mxu1 }
 0x3c0   : > { %v459_v37 = vadd.f32 %v453_v36, %v413_v35  ;;  %v886_v38 = vpop.f32.mrb[1].mxu1 }
 0x3c1   : > { %v456_v39 = vpop.f32.mrb[2].mxu1 }
 0x3c2   : > { %959 = vtanh.f32 %v459_v37  ;;  %v887_v40 = vpop.f32.mrb[3].mxu1  ;;  %v460_v42 = vsub.f32 0.0, %v459_v37 }
 0x3c4   : > { %v461_v43 = vmul.f32 1.442695, %v460_v42 }
 0x3c6   : > { %961 = vpow2.f32 %v461_v43 }
 0x3cc   : > { %v960_v41 = vpop.eup %959 }
 0x3cd   : > { %469 = vrot.lane.b32.xlu1 %v960_v41, %s1025_s7 }
 0x3d0   : > { %v962_v44 = vpop.eup %961 }
 0x3d1   : > { %v463_v45 = vadd.f32 1.0, %v962_v44 }
 0x3d3   : > { %963 = vrcp.f32 %v463_v45 }
 0x3dd   : > { %v964_v46 = vpop.eup %963 }
 0x3de   : > { %v467_v49 = vmul.f32 %v964_v46, %v389_v28 }
 0x43f   : > { %v470_v47 = vpop.permute.xlu1 %469 }
 0x440   : > { %v472_v48 = vmul.f32 %v964_v46, %v470_v47 }
 0x442   : > { %474 = vrot.lane.b32.xlu0 %v472_v48, %s1026_s8 }
 0x4b4   : > { %v475_v50 = vpop.permute.xlu0 %474 }
 0x4b5   : > { %v477_v51 = vadd.f32 %v475_v50, %v467_v49 }
 0x4b7   : > { %965 = vtanh.f32 %v477_v51 }
 0x4c1   : > { %v966_v52 = vpop.eup %965 }
 0x4c2   : > { %480 = vrot.lane.b32.xlu1 %v966_v52, %s1025_s7 }
 0x534   : > { %v481_v53 = vpop.permute.xlu1 %480 }
 0x535   : > { %v483_v54 = vmul.f32 %v964_v46, %v481_v53 }
 0x537   : > { %v1149_v55 = vpack.c.bf16 %v483_v54, %v483_v54 }
 0x539   : > { %500 = vrot.lane.b32.xlu0 %v1149_v55, %s1026_s8 }
 0x5ab   : > { %v501_v56 = vpop.permute.xlu0 %500 }
 0x5ac   : > { %893 = vmatmul.mubr.msk.bf16.vlgmr.msra.gmra.mrb[4].mxu0 %vm296_vm0, %v501_v56 }
 0x67f   : > { %v539_v59 = vpop.f32.mrb[4].mxu0 }
 0x680   : > { %v545_v60 = vadd.f32 %v539_v59, %v499_v58  ;;  %v894_v61 = vpop.f32.mrb[5].mxu0 }
 0x681   : > { %v542_v62 = vpop.f32.mrb[6].mxu0 }
 0x682   : > { %967 = vtanh.f32 %v545_v60  ;;  %v895_v63 = vpop.f32.mrb[7].mxu0  ;;  %v546_v1 = vsub.f32 0.0, %v545_v60 }
 0x684   : > { %v547_v2 = vmul.f32 1.442695, %v546_v1 }
 0x686   : > { %969 = vpow2.f32 %v547_v2 }
 0x68c   : > { %v968_v0 = vpop.eup %967 }
 0x68d   : > { %555 = vrot.lane.b32.xlu1 %v968_v0, %s1025_s7 }
 0x690   : > { %v970_v3 = vpop.eup %969 }
 0x691   : > { %v549_v4 = vadd.f32 1.0, %v970_v3 }
 0x693   : > { %971 = vrcp.f32 %v549_v4 }
 0x69d   : > { %v972_v5 = vpop.eup %971 }
 0x69e   : > { %v553_v8 = vmul.f32 %v972_v5, %v477_v51 }
 0x6ff   : > { %v556_v6 = vpop.permute.xlu1 %555 }
 0x700   : > { %v558_v7 = vmul.f32 %v972_v5, %v556_v6 }
 0x702   : > { %560 = vrot.lane.b32.xlu0 %v558_v7, %s1026_s8 }
 0x774   : > { %v561_v9 = vpop.permute.xlu0 %560 }
 0x775   : > { %v563_v10 = vadd.f32 %v561_v9, %v553_v8 }
 0x777   : > { %973 = vtanh.f32 %v563_v10 }
 0x781   : > { %v974_v11 = vpop.eup %973 }
 0x782   : > { %566 = vrot.lane.b32.xlu1 %v974_v11, %s1025_s7 }
 0x7f4   : > { %v567_v12 = vpop.permute.xlu1 %566 }
 0x7f5   : > { %v569_v13 = vmul.f32 %v972_v5, %v567_v12 }
 0x7f7   : > { %v570_v14 = vpack.c.bf16 %v569_v13, %v569_v13 }
 0x7f9   : > { %585 = vrot.lane.b32.xlu0 %v570_v14, %s1026_s8 }
 0x86b   : > { %v586_v15 = vpop.permute.xlu0 %585 }
 0x86c   : > { %901 = vmatmul.mubr.msk.bf16.vlgmr.msra.gmra.mrb[4].mxu1 %vm296_vm0, %v586_v15 }
 0x93f   : > { %v624_v18 = vpop.f32.mrb[4].mxu1 }
 0x940   : > { %v630_v19 = vadd.f32 %v624_v18, %v584_v17  ;;  %v902_v20 = vpop.f32.mrb[5].mxu1 }
 0x941   : > { %v627_v21 = vpop.f32.mrb[6].mxu1 }
 0x942   : > { %975 = vtanh.f32 %v630_v19  ;;  %v903_v22 = vpop.f32.mrb[7].mxu1  ;;  %v631_v24 = vsub.f32 0.0, %v630_v19 }
 0x944   : > { %v632_v25 = vmul.f32 1.442695, %v631_v24 }
 0x946   : > { %977 = vpow2.f32 %v632_v25 }
 0x94c   : > { %v976_v23 = vpop.eup %975 }
 0x94d   : > { %640 = vrot.lane.b32.xlu1 %v976_v23, %s1025_s7 }
 0x950   : > { %v978_v26 = vpop.eup %977 }
 0x951   : > { %v634_v27 = vadd.f32 1.0, %v978_v26 }
 0x953   : > { %979 = vrcp.f32 %v634_v27 }
 0x95d   : > { %v980_v28 = vpop.eup %979 }
 0x95e   : > { %v638_v31 = vmul.f32 %v980_v28, %v563_v10 }
 0x9bf   : > { %v641_v29 = vpop.permute.xlu1 %640 }
 0x9c0   : > { %v643_v30 = vmul.f32 %v980_v28, %v641_v29 }
 0x9c2   : > { %645 = vrot.lane.b32.xlu0 %v643_v30, %s1026_s8 }
 0x9c6   : > { %400 = vrot.lane.b32.xlu0 %v1127_v32, %s1026_s8 }
 0x9ca   : > { %574 = vrot.lane.b32.xlu0 %v570_v14, %s1026_s8 }
 0xa34   : > { %v646_v33 = vpop.permute.xlu0 %645 }
 0xa35   : > { %v648_v34 = vadd.f32 %v646_v33, %v638_v31 }
 0xa37   : > { %981 = vtanh.f32 %v648_v34 }
 0xa38   : > { %v401_v35 = vpop.permute.xlu0 %400 }
 0xa39   : > { %406 = vst.msk [vmem:[%s404_s3] sm:$0xf] %vm405_vm2, %v401_v35 }
 0xa3c   : > { %v575_v40 = vpop.permute.xlu0 %574 }
 0xa41   : > { %v982_v32 = vpop.eup %981 }
 0xa42   : > { %651 = vrot.lane.b32.xlu1 %v982_v32, %s1025_s7 }
 0xa46   : > { %488 = vrot.lane.b32.xlu1 %v1149_v55, %s1026_s8 }
 0xab4   : > { %v652_v36 = vpop.permute.xlu1 %651 }
 0xab5   : > { %v654_v37 = vmul.f32 %v980_v28, %v652_v36 }
 0xab7   : > { %v858_v38 = vpack.c.bf16 %v654_v37, %v654_v37  ;;  %666 = vrot.lane.b32.xlu0 %v654_v37, %s1026_s8 }
 0xab8   : > { %v489_v39 = vpop.permute.xlu1 %488 }
 0xab9   : > { %493 = vst.msk [vmem:[%s492_s25] sm:$0xf] %vm405_vm2, %v489_v39  ;;  %659 = vrot.lane.b32.xlu1 %v858_v38, %s1026_s8 }
 0xaba   : > { %579 = vst.msk [vmem:[%s578_s26] sm:$0xf] %vm405_vm2, %v575_v40 }
 0xabd   : > { %671 = vrot.lane.b32.xlu1 %v648_v34, %s1027_s11 }
 0xb29   : > { %v667_v41 = vpop.permute.xlu0 %666 }
 0xb2a   : > { %669 = vst.msk [vmem:[#allocation2] sm:$0xff] %vm296_vm0, %v667_v41 }
 0xb2b   : > { %v660_v42 = vpop.permute.xlu1 %659 }
 0xb2c   : > { %664 = vst.msk [vmem:[%s663_s4] sm:$0xf] %vm405_vm2, %v660_v42 }
 0xb2f   : > { %v672_v43 = vpop.permute.xlu1 %671 }
 0xb30   : > { %674 = vst.msk [vmem:[#allocation3] sm:$0xff] %vm296_vm0, %v672_v43 }
 0xb31 PF: > { %s12_s13 = sadd.s32 1, %s1021_s13   ;;  %s1218_s9 = smov %s1009_s10 }
 0xb32   : > { %p9_p10 = scmp.ge.s32.totalorder %s12_s13, 4   ;;  %s1219_s10 = smov %s1078_s17 }
 0xb33   : > { %s1220_s11 = smov %s1017_s12  ;;  %s1221_s12 = smov %s1223_s14 }
 0xb34   :  { %11 = sbr.rel (!%p9_p10) target bundleno = 3 (0x3), region = 119 }

// kernel: _lambda_.13
= control target key start
LH: loop header
LB: loop body
LE: loop exit
PB: predicated region body
PF: predicated region fallthrough
CT: control target
= control target key end

     0   :  { %vm52_vm0 = vcmask 261120   ;;  %s186_s1 = inlined_call_operand.vmem [shape: bf16[32,128], index: 1, kind: input, shape index: {}]   ;;  %s187_s0 = inlined_call_operand.vmem [shape: bf16[32,32], index: 0, kind: input, shape index: {}]   ;;  %s188_s2 = inlined_call_operand.vmem [shape: f32[1,128], index: 2, kind: input, shape index: {}]   ;;  %s189_s3 = inlined_call_operand.vmem [shape: f32[32,128], index: 3, kind: output, shape index: {}]  }
   0x1   :  { %v135_v0 = vld [vmem:[%s186_s1] sm:$0xff]   ;;  %v136_v1 = vld [vmem:[%s186_s1 + $0x8] sm:$0xff]  }
   0x2   :  { %127 = vmatprep.subr.bf16.mxu0 %v135_v0  ;;  %v137_v2 = vld [vmem:[%s187_s0] sm:$0xff]   ;;  %v138_v3 = vld [vmem:[%s187_s0 + $0x8] sm:$0xff]  }
   0x3   :  { %128 = vmatpush3.bf16.msra.mxu0 %v135_v0  ;;  %131 = vmatprep.mubr.msk.bf16.mxu0 %vm52_vm0, %v137_v2  ;;  %v116_v4 = vld [vmem:[%s188_s2] ss:$0 sm:$0xff] }
   0x4   :  { %129 = vmatprep.subr.bf16.mxu0 %v136_v1 }
   0x7   :  { %130 = vmatpush3.bf16.msra.mxu0 %v136_v1 }
   0xa   :  { %132 = vmatmul.mubr.msk.bf16.vlgmr.msra.gmra.mrb[0].mxu0 %vm52_vm0, %v138_v3 }
  0xdd   :  { %v133_v5 = vpop.f32.mrb[0].mxu0 }
  0xde   :  { %v102_v6 = vadd.f32 %v133_v5, %v116_v4  ;;  %v93_v7 = vpop.f32.mrb[1].mxu0 }
  0xdf   :  { %v94_v8 = vadd.f32 %v116_v4, %v93_v7  ;;  %v134_v9 = vpop.f32.mrb[2].mxu0 }
  0xe0   :  { %110 = vst [vmem:[%s189_s3 + $0x10] sm:$0xff] %v102_v6  ;;  %v105_v10 = vadd.f32 %v134_v9, %v116_v4  ;;  %v96_v11 = vpop.f32.mrb[3].mxu0 }
  0xe1   :  { %108 = vst [vmem:[%s189_s3] sm:$0xff] %v94_v8  ;;  %v97_v12 = vadd.f32 %v116_v4, %v96_v11 }
  0xe2   :  { %111 = vst [vmem:[%s189_s3 + $0x18] sm:$0xff] %v105_v10 }
  0xe3   :  { %109 = vst [vmem:[%s189_s3 + $0x8] sm:$0xff] %v97_v12 }

// kernel: _lambda_.9
= control target key start
LH: loop header
LB: loop body
LE: loop exit
PB: predicated region body
PF: predicated region fallthrough
CT: control target
= control target key end

     0   :  { %vm68_vm0 = vcmask 523264   ;;  %s247_s1 = inlined_call_operand.vmem [shape: bf16[64,128], index: 1, kind: input, shape index: {}]   ;;  %s248_s0 = inlined_call_operand.vmem [shape: bf16[32,64], index: 0, kind: input, shape index: {}]   ;;  %s249_s2 = inlined_call_operand.vmem [shape: f32[1,128], index: 2, kind: input, shape index: {}]   ;;  %s250_s3 = inlined_call_operand.vmem [shape: bf16[32,128], index: 3, kind: output, shape index: {}]  }
   0x1   :  { %v194_v0 = vld [vmem:[%s247_s1] sm:$0xff]   ;;  %v195_v1 = vld [vmem:[%s247_s1 + $0x8] sm:$0xff]   ;;  %v196_v2 = vld [vmem:[%s247_s1 + $0x10] sm:$0xff]  }
   0x2   :  { %182 = vmatprep.subr.bf16.mxu0 %v194_v0  ;;  %v198_v3 = vld [vmem:[%s248_s0] sm:$0xff]   ;;  %v197_v4 = vld [vmem:[%s247_s1 + $0x18] sm:$0xff]   ;;  %v199_v5 = vld [vmem:[%s248_s0 + $0x8] sm:$0xff]  }
   0x3   :  { %183 = vmatpush3.bf16.msra.mxu0 %v194_v0  ;;  %190 = vmatprep.mubr.msk.bf16.mxu0 %vm68_vm0, %v198_v3  ;;  %v148_v7 = vld [vmem:[%s249_s2] ss:$0 sm:$0xff] }
   0x4   :  { %184 = vmatprep.subr.bf16.mxu0 %v195_v1 }
   0x7   :  { %185 = vmatpush3.bf16.msra.mxu0 %v195_v1 }
   0x8   :  { %186 = vmatprep.subr.bf16.mxu0 %v196_v2 }
   0xb   :  { %187 = vmatpush3.bf16.msra.mxu0 %v196_v2 }
   0xc   :  { %188 = vmatprep.subr.bf16.mxu0 %v197_v4 }
   0xf   :  { %189 = vmatpush3.bf16.msra.mxu0 %v197_v4 }
  0x12   :  { %191 = vmatmul.mubr.msk.bf16.vlgmr.msra.gmra.mrb[0].mxu0 %vm68_vm0, %v199_v5 }
  0xe5   :  { %v192_v6 = vpop.f32.mrb[0].mxu0 }
  0xe6   :  { %v109_v8 = vpop.f32.mrb[1].mxu0  ;;  %v118_v10 = vadd.f32 %v192_v6, %v148_v7 }
  0xe7   :  { %v193_v9 = vpop.f32.mrb[2].mxu0  ;;  %v110_v13 = vadd.f32 %v148_v7, %v109_v8 }
  0xe8   :  { %v121_v11 = vadd.f32 %v193_v9, %v148_v7  ;;  %v112_v12 = vpop.f32.mrb[3].mxu0 }
  0xe9   :  { %v113_v14 = vadd.f32 %v148_v7, %v112_v12 }
  0xea   :  { %v173_v15 = vpack.c.bf16 %v121_v11, %v118_v10 }
  0xeb   :  { %v168_v16 = vpack.c.bf16 %v113_v14, %v110_v13 }
  0xec   :  { %175 = vst [vmem:[%s250_s3 + $0x8] sm:$0xff] %v173_v15  }
  0xed   :  { %169 = vst [vmem:[%s250_s3] sm:$0xff] %v168_v16  }

</bundles_post_ra>
